<compile_context>
chip_gen: v7x
topology: tpu7x:2x2x1
jax: 0.10.0
libtpu: 0.0.40
codegen_flags: <defaults>
</compile_context>

<pallas_src>
import jax
import jax.numpy as jnp
from jax.experimental import pallas as pl
from jax.experimental.pallas import tpu as pltpu

IN_DIM = 1000     # logical input features (matches nn.Linear(1000, 100))
HID_DIM = 100     # logical hidden features
OUT_DIM = 10      # logical output features
IN_PAD = 1024     # padded K for FC1 (multiple of 128)
HID_PAD = 128     # padded hidden dim (one lane-dense vreg row)


def _round_up(n, m):
    return (n + m - 1) // m * m


def mlp_kernel(x_ref, w1_ref, b1_ref, w2_ref, b2_ref, o_ref):
    # FC1: (TB, 1024) @ (1024, 128) -> f32 accumulate on the MXU (bf16 inputs).
    x = x_ref[...].astype(jnp.bfloat16)
    h = jnp.dot(x, w1_ref[...], preferred_element_type=jnp.float32)
    h = h + b1_ref[...]                                   # f32 bias add (VPU)
    # sigmoid(h) = 1 / (1 + exp(-h)): exp + reciprocal both go to the EUP slot.
    h = pl.reciprocal(1.0 + jnp.exp(-h), approx=True)
    # FC2: (TB, 128) @ (128, 10) -> f32 accumulate. Padded w2 rows are zero, so the
    # 0.5 values in the padded hidden lanes are inert.
    y = jnp.dot(h.astype(jnp.bfloat16), w2_ref[...], preferred_element_type=jnp.float32)
    o_ref[...] = (y + b2_ref[...]).astype(o_ref.dtype)


def net_forward(x, w1, b1, w2, b2, *, tb=256):
    """x: (B, 1000) f32; w1: (1024, 128) bf16; b1: (1, 128) f32;
    w2: (128, 10) bf16; b2: (1, 10) f32  ->  (B, 10) f32."""
    B = x.shape[0]
    # Pad feature dim 1000 -> 1024 (w1's padded rows are zero, so pad values are inert).
    x = jnp.pad(x, ((0, 0), (0, IN_PAD - IN_DIM)))
    # Batch tile: at most tb rows, multiple of 8 sublanes; pad B up to a tile multiple.
    tb = min(tb, _round_up(B, 8))
    b_pad = _round_up(B, tb)
    if b_pad != B:
        x = jnp.pad(x, ((0, b_pad - B), (0, 0)))
    grid = (b_pad // tb,)

    cost = pl.CostEstimate(
        flops=2 * b_pad * IN_PAD * HID_PAD + 2 * b_pad * HID_PAD * OUT_DIM,
        transcendentals=b_pad * HID_PAD,
        bytes_accessed=(x.size * x.dtype.itemsize
                        + w1.size * w1.dtype.itemsize
                        + b1.size * b1.dtype.itemsize
                        + w2.size * w2.dtype.itemsize
                        + b2.size * b2.dtype.itemsize
                        + b_pad * OUT_DIM * 4),
    )

    out = pl.pallas_call(
        mlp_kernel,
        out_shape=jax.ShapeDtypeStruct((b_pad, OUT_DIM), jnp.float32),
        grid_spec=pl.GridSpec(
            grid=grid,
            in_specs=[
                # x: tiled along batch, double-buffered by the pipeline.
                pl.BlockSpec((tb, IN_PAD), lambda i: (i, 0)),
                # Weights/biases: constant index_map -> fetched once, VMEM-resident.
                pl.BlockSpec((IN_PAD, HID_PAD), lambda i: (0, 0)),
                pl.BlockSpec((1, HID_PAD), lambda i: (0, 0)),
                pl.BlockSpec((HID_PAD, OUT_DIM), lambda i: (0, 0)),
                pl.BlockSpec((1, OUT_DIM), lambda i: (0, 0)),
            ],
            out_specs=pl.BlockSpec((tb, OUT_DIM), lambda i: (i, 0)),
        ),
        compiler_params=pltpu.CompilerParams(
            # Batch tiles are independent -> shard across both TCs on v7x.
            dimension_semantics=("parallel",),
            vmem_limit_bytes=32 * 1024 * 1024,
        ),
        cost_estimate=cost,
    )(x, w1, b1, w2, b2)
    return out[:B]


def init_params(key):
    """nn.Linear-style U(-1/sqrt(fan_in), 1/sqrt(fan_in)) init, then pad + cast.

    Weights are stored as (in, out) so the kernel computes y = x @ W + b (PyTorch stores
    (out, in); the transpose happens once here). Padded rows/cols are zero."""
    k1, k2, k3, k4 = jax.random.split(key, 4)
    bound1 = 1.0 / jnp.sqrt(jnp.float32(IN_DIM))
    bound2 = 1.0 / jnp.sqrt(jnp.float32(HID_DIM))
    w1 = jax.random.uniform(k1, (IN_DIM, HID_DIM), jnp.float32, -bound1, bound1)
    b1 = jax.random.uniform(k2, (1, HID_DIM), jnp.float32, -bound1, bound1)
    w2 = jax.random.uniform(k3, (HID_DIM, OUT_DIM), jnp.float32, -bound2, bound2)
    b2 = jax.random.uniform(k4, (1, OUT_DIM), jnp.float32, -bound2, bound2)
    # Zero-pad: w1 -> (1024, 128), b1 -> (1, 128), w2 -> (128, 10). Weights to bf16.
    w1p = jnp.pad(w1, ((0, IN_PAD - IN_DIM), (0, HID_PAD - HID_DIM))).astype(jnp.bfloat16)
    b1p = jnp.pad(b1, ((0, 0), (0, HID_PAD - HID_DIM)))
    w2p = jnp.pad(w2, ((0, HID_PAD - HID_DIM), (0, 0))).astype(jnp.bfloat16)
    return w1p, b1p, w2p, b2


if __name__ == "__main__":
    key = jax.random.PRNGKey(0)
    kx, kp = jax.random.split(key)

    batch = 64  # matches the module's batch_size; kernel tiles arbitrary B
    x = jax.random.normal(kx, (batch, IN_DIM), jnp.float32)
    w1, b1, w2, b2 = init_params(kp)

    out = net_forward(x, w1, b1, w2, b2)
    out = jax.block_until_ready(out)
    assert out.shape == (batch, OUT_DIM)

    # Reference in plain JAX, mimicking the kernel's bf16 rounding of x / h.
    xb = jnp.pad(x, ((0, 0), (0, IN_PAD - IN_DIM))).astype(jnp.bfloat16).astype(jnp.float32)
    h_ref = jax.nn.sigmoid(xb @ w1.astype(jnp.float32) + b1)
    h_ref = h_ref.astype(jnp.bfloat16).astype(jnp.float32)
    ref = h_ref @ w2.astype(jnp.float32) + b2

    assert jnp.allclose(out, ref, atol=5e-2, rtol=5e-2), float(jnp.max(jnp.abs(out - ref)))
    print("KERNEL_OK")
</pallas_src>

<mosaic_0001>
module attributes {stable_mosaic.version = 11 : i64} {
  func.func @mlp_kernel(%arg0: i32, %arg1: memref<64x1024xf32, #tpu.memory_space<vmem>>, %arg2: memref<1024x128xbf16, #tpu.memory_space<vmem>>, %arg3: memref<1x128xf32, #tpu.memory_space<vmem>>, %arg4: memref<128x10xbf16, #tpu.memory_space<vmem>>, %arg5: memref<1x10xf32, #tpu.memory_space<vmem>>, %arg6: memref<64x10xf32, #tpu.memory_space<vmem>>) attributes {dimension_semantics = [#tpu.dimension_semantics<parallel>], iteration_bounds = array<i64: 1>, scalar_prefetch = 0 : i64, scratch_operands = 0 : i64, tpu.core_type = #tpu.core_type<tc>, window_params = [{transform_indices = @transform_0, window_bounds = array<i64: 64, 1024>}, {pipeline_mode = #tpu.pipeline_mode<synchronous>, transform_indices = @transform_1, window_bounds = array<i64: 1024, 128>}, {pipeline_mode = #tpu.pipeline_mode<synchronous>, transform_indices = @transform_2, window_bounds = array<i64: 1, 128>}, {pipeline_mode = #tpu.pipeline_mode<synchronous>, transform_indices = @transform_3, window_bounds = array<i64: 128, 10>}, {pipeline_mode = #tpu.pipeline_mode<synchronous>, transform_indices = @transform_4, window_bounds = array<i64: 1, 10>}, {transform_indices = @transform_5, window_bounds = array<i64: 64, 10>}]} {
    %c0 = arith.constant 0 : index
    %c0_0 = arith.constant 0 : index
    %0 = vector.load %arg1[%c0, %c0_0] : memref<64x1024xf32, #tpu.memory_space<vmem>>, vector<64x1024xf32>
    %1 = arith.truncf %0 : vector<64x1024xf32> to vector<64x1024xbf16>
    %c0_1 = arith.constant 0 : index
    %c0_2 = arith.constant 0 : index
    %2 = vector.load %arg2[%c0_1, %c0_2] : memref<1024x128xbf16, #tpu.memory_space<vmem>>, vector<1024x128xbf16>
    %cst = arith.constant dense<0.000000e+00> : vector<64x128xf32>
    %3 = tpu.matmul %1, %2, %cst {dimension_numbers = #tpu.dot_dimension_numbers<[1], [0], [0], [1], [0, 0, 1, 1], [], []>} : vector<64x1024xbf16>, vector<1024x128xbf16>, vector<64x128xf32> -> vector<64x128xf32>
    %c0_3 = arith.constant 0 : index
    %c0_4 = arith.constant 0 : index
    %4 = vector.load %arg3[%c0_3, %c0_4] : memref<1x128xf32, #tpu.memory_space<vmem>>, vector<1x128xf32>
    %5 = vector.broadcast %4 : vector<1x128xf32> to vector<64x128xf32>
    %6 = arith.addf %3, %5 : vector<64x128xf32>
    %cst_5 = arith.constant 0.000000e+00 : f32
    %7 = vector.broadcast %cst_5 : f32 to vector<64x128xf32>
    %8 = arith.subf %7, %6 : vector<64x128xf32>
    %9 = math.exp %8 : vector<64x128xf32>
    %cst_6 = arith.constant 1.000000e+00 : f32
    %10 = vector.broadcast %cst_6 : f32 to vector<64x128xf32>
    %11 = arith.addf %10, %9 : vector<64x128xf32>
    %12 = tpu.reciprocal %11 {approx = true} : vector<64x128xf32> -> vector<64x128xf32>
    %13 = arith.truncf %12 : vector<64x128xf32> to vector<64x128xbf16>
    %c0_7 = arith.constant 0 : index
    %c0_8 = arith.constant 0 : index
    %14 = vector.load %arg4[%c0_7, %c0_8] : memref<128x10xbf16, #tpu.memory_space<vmem>>, vector<128x10xbf16>
    %cst_9 = arith.constant dense<0.000000e+00> : vector<64x10xf32>
    %15 = tpu.matmul %13, %14, %cst_9 {dimension_numbers = #tpu.dot_dimension_numbers<[1], [0], [0], [1], [0, 0, 1, 1], [], []>} : vector<64x128xbf16>, vector<128x10xbf16>, vector<64x10xf32> -> vector<64x10xf32>
    %c0_10 = arith.constant 0 : index
    %c0_11 = arith.constant 0 : index
    %16 = vector.load %arg5[%c0_10, %c0_11] : memref<1x10xf32, #tpu.memory_space<vmem>>, vector<1x10xf32>
    %17 = vector.broadcast %16 : vector<1x10xf32> to vector<64x10xf32>
    %18 = arith.addf %15, %17 : vector<64x10xf32>
    %c0_12 = arith.constant 0 : index
    %c0_13 = arith.constant 0 : index
    %19 = vector.load %arg6[%c0_12, %c0_13] : memref<64x10xf32, #tpu.memory_space<vmem>>, vector<64x10xf32>
    tpu.vector_store %arg6[%c0_12, %c0_13], %18 {strides = array<i32>} : memref<64x10xf32, #tpu.memory_space<vmem>>, vector<64x10xf32>,
    return
  }
  func.func @transform_0(%arg0: i32) -> (i32, i32) {
    %c0_i32 = arith.constant 0 : i32
    %c0_i32_0 = arith.constant 0 : i32
    return %arg0, %c0_i32 : i32, i32
  }
  func.func @transform_1(%arg0: i32) -> (i32, i32) {
    %c0_i32 = arith.constant 0 : i32
    %c0_i32_0 = arith.constant 0 : i32
    %c0_i32_1 = arith.constant 0 : i32
    return %c0_i32, %c0_i32_0 : i32, i32
  }
  func.func @transform_2(%arg0: i32) -> (i32, i32) {
    %c0_i32 = arith.constant 0 : i32
    %c0_i32_0 = arith.constant 0 : i32
    %c0_i32_1 = arith.constant 0 : i32
    return %c0_i32, %c0_i32_0 : i32, i32
  }
  func.func @transform_3(%arg0: i32) -> (i32, i32) {
    %c0_i32 = arith.constant 0 : i32
    %c0_i32_0 = arith.constant 0 : i32
    %c0_i32_1 = arith.constant 0 : i32
    return %c0_i32, %c0_i32_0 : i32, i32
  }
  func.func @transform_4(%arg0: i32) -> (i32, i32) {
    %c0_i32 = arith.constant 0 : i32
    %c0_i32_0 = arith.constant 0 : i32
    %c0_i32_1 = arith.constant 0 : i32
    return %c0_i32, %c0_i32_0 : i32, i32
  }
  func.func @transform_5(%arg0: i32) -> (i32, i32) {
    %c0_i32 = arith.constant 0 : i32
    %c0_i32_0 = arith.constant 0 : i32
    return %arg0, %c0_i32 : i32, i32
  }
}

</mosaic_0001>

<bundles_post_ra>
// kernel: tpu_custom_call.1
= control target key start
LH: loop header
LB: loop body
LE: loop exit
PB: predicated region body
PF: predicated region fallthrough
CT: control target
= control target key end

     0   :  { %10 = vsyncpa [#allocation3], 0  ;;  %s1704_s0 = inlined_call_operand.hbm [shape: f32[64,1024], index: 0, kind: input, shape index: {}]   ;;  %s1705_s1 = inlined_call_operand.hbm [shape: bf16[1024,128], index: 1, kind: input, shape index: {}]   ;;  %s1706_s2 = inlined_call_operand.vmem [shape: f32[1,128], index: 2, kind: input, shape index: {}]   ;;  %s1707_s3 = inlined_call_operand.vmem [shape: bf16[128,10], index: 3, kind: input, shape index: {}]   ;;  %s1708_s4 = inlined_call_operand.vmem [shape: f32[1,10], index: 4, kind: input, shape index: {}]   ;;  %s1709_s5 = inlined_call_operand.vmem [shape: f32[64,10], index: 5, kind: output, shape index: {}]  }
   0x1   :  { %11 = vsyncpa [#allocation5], 0  ;;  %s1562_s18 = smov [#allocation2]   ;;  %s1514_s22 = scalar_lea.hbm %s1704_s0, 8192 }
   0x2   :  { %s17_s19 = sshll.u32 %s1562_s18, 4  ;;  %p1515_p0 = scmp.ne.s32.totalorder %s1704_s0, %s1514_s22  ;;  %s18_s19 = int_to_ptr.vmem [resolvable:$true] %s17_s19 }
   0x3   :  { %p1518_p1 = scmp.lt.u32.totalorder %s1514_s22, %s1704_s0 }
   0x5   :  { %p1520_p2 = pnand %p1518_p1, %p1515_p0 }
   0x7   :  { %1523 = shalt.err (!%p1520_p2)
}
   0x8   :  { %s1524_s27 = scalar_lea.vmem %s18_s19, 8192  ;;  %p1529_p4 = scmp.lt.s32.totalorder %s18_s19, %s18_s19 }
   0x9   :  { %p1525_p3 = scmp.ne.s32.totalorder %s18_s19, %s1524_s27  ;;  %p1530_p5 = scmp.lt.s32.totalorder %s1524_s27, %s1524_s27 }
   0xb   :  { %p1531_p6 = por %p1530_p5, %p1529_p4 }
   0xd   :  { %p1532_p7 = pnand %p1531_p6, %p1525_p3 }
   0xf   :  { %1535 = shalt.err (!%p1532_p7)
}
  0x10   :  { %s1563_s28 = smov 1024   ;;  %s1564_s29 = smov 64  }
  0x11   :  { %23 = dma.hbm_to_vmem [thread:$0]  %s1704_s0, 8192, %s18_s19, [#allocation3], %s1563_s28, %s1563_s28, %s1564_s29  }
  0x12   :  { %s1565_s7 = smov [#allocation4]   ;;  %s1536_s11 = scalar_lea.hbm %s1705_s1, 8192 }
  0x13   :  { %s29_s8 = sshll.u32 %s1565_s7, 4  ;;  %p1537_p8 = scmp.ne.s32.totalorder %s1705_s1, %s1536_s11  ;;  %s30_s8 = int_to_ptr.vmem [resolvable:$true] %s29_s8 }
  0x14   :  { %p1540_p9 = scmp.lt.u32.totalorder %s1536_s11, %s1705_s1 }
  0x16   :  { %p1542_p10 = pnand %p1540_p9, %p1537_p8 }
  0x18   :  { %1545 = shalt.err (!%p1542_p10)
}
  0x19   :  { %s1546_s16 = scalar_lea.vmem %s30_s8, 8192  ;;  %p1551_p12 = scmp.lt.s32.totalorder %s30_s8, %s30_s8 }
  0x1a   :  { %p1547_p11 = scmp.ne.s32.totalorder %s30_s8, %s1546_s16  ;;  %p1552_p13 = scmp.lt.s32.totalorder %s1546_s16, %s1546_s16 }
  0x1c   :  { %p1553_p0 = por %p1552_p13, %p1551_p12 }
  0x1e   :  { %p1554_p1 = pnand %p1553_p0, %p1547_p11 }
  0x20   :  { %1557 = shalt.err (!%p1554_p1)
}
  0x21   :  { %s1566_s0 = smov 4  }
  0x22   :  { %35 = dma.hbm_to_vmem [thread:$0]  %s1705_s1, 8192, %s30_s8, [#allocation5], %s1564_s29, %s1564_s29, %s1566_s0  }
  0x23   :  { %1558 = dma.done.wait [#allocation3], 8192  }
  0x24   :  { %1559 = vsyncadd [#allocation3], 4294959104 }
  0x25   :  { %1560 = dma.done.wait [#allocation5], 8192  }
  0x26   :  { %1561 = vsyncadd [#allocation5], 4294959104  ;;  %v1410_v0 = vld [vmem:[#allocation4 + $0x40] sm:$0xff]   ;;  %v1414_v4 = vld [vmem:[#allocation4 + $0x48] sm:$0xff]   ;;  %vm1104_vm0 = vcmask 80896  }
  0x27   :  { %v1411_v1 = vld [vmem:[#allocation4 + $0xc0] sm:$0xff]   ;;  %1193 = vmatprep.subr.bf16.mxu0 %v1410_v0  ;;  %v1415_v5 = vld [vmem:[#allocation4 + $0xc8] sm:$0xff]   ;;  %v1418_v8 = vld [vmem:[#allocation4 + $0x50] sm:$0xff]  }
  0x28   :  { %v1412_v2 = vld [vmem:[#allocation4] sm:$0xff]   ;;  %1233 = vmatprep.subr.bf16.mxu1 %v1411_v1  ;;  %v1416_v6 = vld [vmem:[#allocation4 + $0x8] sm:$0xff]   ;;  %v1419_v9 = vld [vmem:[#allocation4 + $0xd0] sm:$0xff]  }
  0x29   :  { %v1413_v3 = vld [vmem:[#allocation4 + $0x80] sm:$0xff]   ;;  %1194 = vmatpush3.bf16.msra.mxu0 %v1412_v2  ;;  %v1417_v7 = vld [vmem:[#allocation4 + $0x88] sm:$0xff]   ;;  %v1420_v10 = vld [vmem:[#allocation4 + $0x10] sm:$0xff]  }
  0x2a   :  { %1234 = vmatpush3.bf16.msra.mxu1 %v1413_v3  ;;  %1195 = vmatprep.subr.bf16.mxu0 %v1414_v4  ;;  %v1421_v11 = vld [vmem:[#allocation4 + $0x90] sm:$0xff]   ;;  %v1422_v12 = vld [vmem:[#allocation4 + $0x58] sm:$0xff]   ;;  %v1426_v16 = vld [vmem:[#allocation4 + $0x60] sm:$0xff]  }
  0x2b   :  { %1235 = vmatprep.subr.bf16.mxu1 %v1415_v5  ;;  %v1423_v13 = vld [vmem:[#allocation4 + $0xd8] sm:$0xff]   ;;  %v1427_v17 = vld [vmem:[#allocation4 + $0xe0] sm:$0xff]   ;;  %v1430_v20 = vld [vmem:[#allocation4 + $0x68] sm:$0xff]  }
  0x2c   :  { %v1424_v14 = vld [vmem:[#allocation4 + $0x18] sm:$0xff]   ;;  %v1428_v18 = vld [vmem:[#allocation4 + $0x20] sm:$0xff]   ;;  %v1431_v21 = vld [vmem:[#allocation4 + $0xe8] sm:$0xff]  }
  0x2d   :  { %1196 = vmatpush3.bf16.msra.mxu0 %v1416_v6  ;;  %v1425_v15 = vld [vmem:[#allocation4 + $0x98] sm:$0xff]   ;;  %v1429_v19 = vld [vmem:[#allocation4 + $0xa0] sm:$0xff]   ;;  %v1432_v22 = vld [vmem:[#allocation4 + $0x28] sm:$0xff]  }
  0x2e   :  { %1236 = vmatpush3.bf16.msra.mxu1 %v1417_v7  ;;  %1197 = vmatprep.subr.bf16.mxu0 %v1418_v8  ;;  %v1433_v23 = vld [vmem:[#allocation4 + $0xa8] sm:$0xff]   ;;  %v1434_v24 = vld [vmem:[#allocation4 + $0x70] sm:$0xff]   ;;  %v1438_v28 = vld [vmem:[#allocation4 + $0x78] sm:$0xff]  }
  0x2f   :  { %1237 = vmatprep.subr.bf16.mxu1 %v1419_v9  ;;  %v1435_v25 = vld [vmem:[#allocation4 + $0xf0] sm:$0xff]   ;;  %v1439_v29 = vld [vmem:[#allocation4 + $0xf8] sm:$0xff]   ;;  %v50_v32 = vld [vmem:[#allocation2 + $0x8] sm:$0xff] }
  0x30   :  { %v1436_v26 = vld [vmem:[#allocation4 + $0x30] sm:$0xff]   ;;  %v1440_v30 = vld [vmem:[#allocation4 + $0x38] sm:$0xff]   ;;  %v58_v33 = vld [vmem:[#allocation2 + $0x48] sm:$0xff] }
  0x31   :  { %1198 = vmatpush3.bf16.msra.mxu0 %v1420_v10  ;;  %v1437_v27 = vld [vmem:[#allocation4 + $0xb0] sm:$0xff]   ;;  %v1441_v31 = vld [vmem:[#allocation4 + $0xb8] sm:$0xff]   ;;  %v114_v35 = vpack.c.bf16 %v58_v33, %v50_v32  ;;  %v49_v37 = vld [vmem:[#allocation2] sm:$0xff] }
  0x32   :  { %1238 = vmatpush3.bf16.msra.mxu1 %v1421_v11  ;;  %1199 = vmatprep.subr.bf16.mxu0 %v1422_v12  ;;  %v52_v34 = vld [vmem:[#allocation2 + $0x18] sm:$0xff]  ;;  %v57_v38 = vld [vmem:[#allocation2 + $0x40] sm:$0xff]  ;;  %v51_v41 = vld [vmem:[#allocation2 + $0x10] sm:$0xff] }
  0x33   :  { %1239 = vmatprep.subr.bf16.mxu1 %v1423_v13  ;;  %v60_v36 = vld [vmem:[#allocation2 + $0x58] sm:$0xff]  ;;  %v113_v40 = vpack.c.bf16 %v57_v38, %v49_v37  ;;  %v59_v42 = vld [vmem:[#allocation2 + $0x50] sm:$0xff]  ;;  %696 = vmatprep.mubr.bf16.mxu0 %v114_v35  ;;  %v1442_v44 = vld [vmem:[#allocation4 + $0x140] sm:$0xff]  }
  0x34   :  { %v116_v39 = vpack.c.bf16 %v60_v36, %v52_v34  ;;  %v115_v43 = vpack.c.bf16 %v59_v42, %v51_v41  ;;  %v1443_v45 = vld [vmem:[#allocation4 + $0x1c0] sm:$0xff]   ;;  %v1446_v48 = vld [vmem:[#allocation4 + $0x148] sm:$0xff]   ;;  %v68_v54 = vld [vmem:[#allocation2 + $0x98] sm:$0xff] }
  0x35   :  { %1200 = vmatpush3.bf16.msra.mxu0 %v1424_v14  ;;  %v1444_v46 = vld [vmem:[#allocation4 + $0x100] sm:$0xff]   ;;  %v1447_v49 = vld [vmem:[#allocation4 + $0x1c8] sm:$0xff]   ;;  %v76_v55 = vld [vmem:[#allocation2 + $0xd8] sm:$0xff] }
  0x36   :  { %1240 = vmatpush3.bf16.msra.mxu1 %v1425_v15  ;;  %1201 = vmatprep.subr.bf16.mxu0 %v1426_v16  ;;  %v1445_v47 = vld [vmem:[#allocation4 + $0x180] sm:$0xff]   ;;  %v1448_v50 = vld [vmem:[#allocation4 + $0x108] sm:$0xff]   ;;  %v124_v57 = vpack.c.bf16 %v76_v55, %v68_v54  ;;  %v67_v60 = vld [vmem:[#allocation2 + $0x90] sm:$0xff] }
  0x37   :  { %1241 = vmatprep.subr.bf16.mxu1 %v1427_v17  ;;  %761 = vmatprep.mubr.bf16.mxu1 %v116_v39  ;;  %v1449_v51 = vld [vmem:[#allocation4 + $0x188] sm:$0xff]   ;;  %v65_v58 = vld [vmem:[#allocation2 + $0x80] sm:$0xff]  ;;  %v75_v62 = vld [vmem:[#allocation2 + $0xd0] sm:$0xff] }
  0x38   :  { %v66_v52 = vld [vmem:[#allocation2 + $0x88] sm:$0xff]  ;;  %v73_v59 = vld [vmem:[#allocation2 + $0xc0] sm:$0xff]  ;;  %v123_v63 = vpack.c.bf16 %v75_v62, %v67_v60  ;;  %v1450_v0 = vld [vmem:[#allocation4 + $0x150] sm:$0xff]  }
  0x39   :  { %1202 = vmatpush3.bf16.msra.mxu0 %v1428_v18  ;;  %v74_v53 = vld [vmem:[#allocation2 + $0xc8] sm:$0xff]  ;;  %v121_v61 = vpack.c.bf16 %v73_v59, %v65_v58  ;;  %v1451_v1 = vld [vmem:[#allocation4 + $0x1d0] sm:$0xff]   ;;  %v1454_v4 = vld [vmem:[#allocation4 + $0x158] sm:$0xff]  }
  0x3a   :  { %1242 = vmatpush3.bf16.msra.mxu1 %v1429_v19  ;;  %1203 = vmatprep.subr.bf16.mxu0 %v1430_v20  ;;  %v122_v56 = vpack.c.bf16 %v74_v53, %v66_v52  ;;  %v1452_v2 = vld [vmem:[#allocation4 + $0x110] sm:$0xff]   ;;  %v1455_v5 = vld [vmem:[#allocation4 + $0x1d8] sm:$0xff]   ;;  %v82_v8 = vld [vmem:[#allocation2 + $0x108] sm:$0xff] }
  0x3b   :  { %1243 = vmatprep.subr.bf16.mxu1 %v1431_v21  ;;  %v1453_v3 = vld [vmem:[#allocation4 + $0x190] sm:$0xff]   ;;  %v1456_v6 = vld [vmem:[#allocation4 + $0x118] sm:$0xff]   ;;  %v90_v9 = vld [vmem:[#allocation2 + $0x148] sm:$0xff] }
  0x3c   :  { %v1457_v7 = vld [vmem:[#allocation4 + $0x198] sm:$0xff]   ;;  %v130_v10 = vpack.c.bf16 %v90_v9, %v82_v8  ;;  %v81_v13 = vld [vmem:[#allocation2 + $0x100] sm:$0xff]  ;;  %v83_v16 = vld [vmem:[#allocation2 + $0x110] sm:$0xff] }
  0x3d   :  { %1204 = vmatpush3.bf16.msra.mxu0 %v1432_v22  ;;  %v84_v11 = vld [vmem:[#allocation2 + $0x118] sm:$0xff]  ;;  %v89_v15 = vld [vmem:[#allocation2 + $0x140] sm:$0xff]  ;;  %v91_v17 = vld [vmem:[#allocation2 + $0x150] sm:$0xff] }
  0x3e   :  { %1244 = vmatpush3.bf16.msra.mxu1 %v1433_v23  ;;  %1205 = vmatprep.subr.bf16.mxu0 %v1434_v24  ;;  %v92_v12 = vld [vmem:[#allocation2 + $0x158] sm:$0xff]  ;;  %v129_v18 = vpack.c.bf16 %v89_v15, %v81_v13  ;;  %v131_v19 = vpack.c.bf16 %v91_v17, %v83_v16  ;;  %v1458_v20 = vld [vmem:[#allocation4 + $0x160] sm:$0xff]   ;;  %v1462_v24 = vld [vmem:[#allocation4 + $0x168] sm:$0xff]  }
  0x3f   :  { %1245 = vmatprep.subr.bf16.mxu1 %v1435_v25  ;;  %v132_v14 = vpack.c.bf16 %v92_v12, %v84_v11  ;;  %v1459_v21 = vld [vmem:[#allocation4 + $0x1e0] sm:$0xff]   ;;  %v1463_v25 = vld [vmem:[#allocation4 + $0x1e8] sm:$0xff]   ;;  %v108_v32 = vld [vmem:[#allocation2 + $0x1d8] sm:$0xff] }
  0x40   :  { %v1460_v22 = vld [vmem:[#allocation4 + $0x120] sm:$0xff]   ;;  %v99_v37 = vld [vmem:[#allocation2 + $0x190] sm:$0xff]  ;;  %v70_v59 = vld [vmem:[#allocation2 + $0xa8] sm:$0xff] }
  0x41   :  { %1206 = vmatpush3.bf16.msra.mxu0 %v1436_v26  ;;  %v1461_v23 = vld [vmem:[#allocation4 + $0x1a0] sm:$0xff]   ;;  %v1464_v26 = vld [vmem:[#allocation4 + $0x128] sm:$0xff]   ;;  %v107_v38 = vld [vmem:[#allocation2 + $0x1d0] sm:$0xff] }
  0x42   :  { %1246 = vmatpush3.bf16.msra.mxu1 %v1437_v27  ;;  %1207 = vmatprep.subr.bf16.mxu0 %v1438_v28  ;;  %v1465_v27 = vld [vmem:[#allocation4 + $0x1a8] sm:$0xff]   ;;  %v97_v33 = vld [vmem:[#allocation2 + $0x180] sm:$0xff]  ;;  %v139_v39 = vpack.c.bf16 %v107_v38, %v99_v37  ;;  %v1467_v41 = vld [vmem:[#allocation4 + $0x1f0] sm:$0xff]  }
  0x43   :  { %1247 = vmatprep.subr.bf16.mxu1 %v1439_v29  ;;  %v98_v28 = vld [vmem:[#allocation2 + $0x188] sm:$0xff]  ;;  %v105_v34 = vld [vmem:[#allocation2 + $0x1c0] sm:$0xff]  ;;  %v1468_v42 = vld [vmem:[#allocation4 + $0x130] sm:$0xff]  }
  0x44   :  { %v106_v29 = vld [vmem:[#allocation2 + $0x1c8] sm:$0xff]  ;;  %v137_v36 = vpack.c.bf16 %v105_v34, %v97_v33  ;;  %v53_v54 = vld [vmem:[#allocation2 + $0x20] sm:$0xff]  ;;  %v63_v58 = vld [vmem:[#allocation2 + $0x70] sm:$0xff] }
  0x45   :  { %1208 = vmatpush3.bf16.msra.mxu0 %v1440_v30  ;;  %v100_v30 = vld [vmem:[#allocation2 + $0x198] sm:$0xff]  ;;  %v61_v55 = vld [vmem:[#allocation2 + $0x60] sm:$0xff]  ;;  %v78_v60 = vld [vmem:[#allocation2 + $0xe8] sm:$0xff] }
  0x46   :  { %1248 = vmatpush3.bf16.msra.mxu1 %v1441_v31  ;;  %1273 = vmatprep.subr.bf16.mxu0 %v1442_v44  ;;  %v138_v31 = vpack.c.bf16 %v106_v29, %v98_v28  ;;  %v140_v35 = vpack.c.bf16 %v108_v32, %v100_v30  ;;  %v1470_v44 = vld [vmem:[#allocation4 + $0x178] sm:$0xff]   ;;  %v126_v62 = vpack.c.bf16 %v78_v60, %v70_v59  ;;  %v93_v15 = vld [vmem:[#allocation2 + $0x160] sm:$0xff]  ;;  %v87_v16 = vld [vmem:[#allocation2 + $0x130] sm:$0xff] }
  0x47   :  { %1313 = vmatprep.subr.bf16.mxu1 %v1443_v45  ;;  %v1471_v45 = vld [vmem:[#allocation4 + $0x1f8] sm:$0xff]   ;;  %v95_v17 = vld [vmem:[#allocation2 + $0x170] sm:$0xff]  ;;  %v1474_v32 = vld [vmem:[%s1707_s3] sm:$0xff]  }
  0x48   :  { %697 = vmatmul.mubr.bf16.vlgmr.msra.gmra.mrb[0].mxu0 %v113_v40  ;;  %v1466_v40 = vld [vmem:[#allocation4 + $0x170] sm:$0xff]   ;;  %v88_v8 = vld [vmem:[#allocation2 + $0x138] sm:$0xff]  ;;  %v1475_v33 = vld [vmem:[%s1707_s3 + $0x8] sm:$0xff]  }
  0x49   :  { %762 = vmatmul.mubr.bf16.vlgmr.msra.gmra.mrb[0].mxu1 %v115_v43  ;;  %1274 = vmatpush3.bf16.msra.mxu0 %v1444_v46  ;;  %v1469_v43 = vld [vmem:[#allocation4 + $0x1b0] sm:$0xff]   ;;  %v1472_v46 = vld [vmem:[#allocation4 + $0x138] sm:$0xff]   ;;  %v1479_v37 = vld [vmem:[%s1707_s3 + $0x28] sm:$0xff]  }
  0x4a   :  { %1314 = vmatpush3.bf16.msra.mxu1 %v1445_v47  ;;  %1275 = vmatprep.subr.bf16.mxu0 %v1446_v48  ;;  %v1473_v47 = vld [vmem:[#allocation4 + $0x1b8] sm:$0xff]   ;;  %v54_v48 = vld [vmem:[#allocation2 + $0x28] sm:$0xff]  ;;  %v103_v28 = vld [vmem:[#allocation2 + $0x1b0] sm:$0xff] }
  0x4b   :  { %1315 = vmatprep.subr.bf16.mxu1 %v1447_v49  ;;  %704 = vmatprep.mubr.bf16.mxu0 %v122_v56  ;;  %v62_v49 = vld [vmem:[#allocation2 + $0x68] sm:$0xff]  ;;  %v55_v56 = vld [vmem:[#allocation2 + $0x30] sm:$0xff]  ;;  %v96_v9 = vld [vmem:[#allocation2 + $0x178] sm:$0xff] }
  0x4c   :  { %769 = vmatprep.mubr.bf16.mxu1 %v124_v57  ;;  %v118_v52 = vpack.c.bf16 %v62_v49, %v54_v48  ;;  %v117_v57 = vpack.c.bf16 %v61_v55, %v53_v54  ;;  %v136_v13 = vpack.c.bf16 %v96_v9, %v88_v8  ;;  %v111_v29 = vld [vmem:[#allocation2 + $0x1f0] sm:$0xff] }
  0x4d   :  { %1276 = vmatpush3.bf16.msra.mxu0 %v1448_v50  ;;  %v56_v50 = vld [vmem:[#allocation2 + $0x38] sm:$0xff]  ;;  %v1476_v34 = vld [vmem:[%s1707_s3 + $0x10] sm:$0xff]  }
  0x4e   :  { %1316 = vmatpush3.bf16.msra.mxu1 %v1449_v51  ;;  %1277 = vmatprep.subr.bf16.mxu0 %v1450_v0  ;;  %v64_v51 = vld [vmem:[#allocation2 + $0x78] sm:$0xff]  ;;  %v1480_v38 = vld [vmem:[%s1707_s3 + $0x30] sm:$0xff]  }
  0x4f   :  { %1317 = vmatprep.subr.bf16.mxu1 %v1451_v1  ;;  %v120_v53 = vpack.c.bf16 %v64_v51, %v56_v50  ;;  %v80_v0 = vld [vmem:[#allocation2 + $0xf8] sm:$0xff] }
  0x50   :  { %705 = vmatmul.mubr.bf16.gmra.mrb[4].mxu0 %v121_v61  ;;  %v119_v61 = vpack.c.bf16 %v63_v58, %v55_v56 }
  0x51   :  { %770 = vmatmul.mubr.bf16.gmra.mrb[4].mxu1 %v123_v63  ;;  %1278 = vmatpush3.bf16.msra.mxu0 %v1452_v2  ;;  %v72_v63 = vld [vmem:[#allocation2 + $0xb8] sm:$0xff]  ;;  %v69_v2 = vld [vmem:[#allocation2 + $0xa0] sm:$0xff] }
  0x52   :  { %1318 = vmatpush3.bf16.msra.mxu1 %v1453_v3  ;;  %1279 = vmatprep.subr.bf16.mxu0 %v1454_v4  ;;  %v128_v1 = vpack.c.bf16 %v80_v0, %v72_v63  ;;  %v77_v3 = vld [vmem:[#allocation2 + $0xe0] sm:$0xff]  ;;  %v71_v4 = vld [vmem:[#allocation2 + $0xb0] sm:$0xff] }
  0x53   :  { %1319 = vmatprep.subr.bf16.mxu1 %v1455_v5  ;;  %712 = vmatprep.mubr.bf16.mxu0 %v130_v10  ;;  %v79_v5 = vld [vmem:[#allocation2 + $0xf0] sm:$0xff]  ;;  %v125_v10 = vpack.c.bf16 %v77_v3, %v69_v2 }
  0x54   :  { %777 = vmatprep.mubr.bf16.mxu1 %v132_v14  ;;  %v127_v11 = vpack.c.bf16 %v79_v5, %v71_v4  ;;  %v85_v14 = vld [vmem:[#allocation2 + $0x120] sm:$0xff] }
  0x55   :  { %1280 = vmatpush3.bf16.msra.mxu0 %v1456_v6  ;;  %v86_v6 = vld [vmem:[#allocation2 + $0x128] sm:$0xff] }
  0x56   :  { %1320 = vmatpush3.bf16.msra.mxu1 %v1457_v7  ;;  %1281 = vmatprep.subr.bf16.mxu0 %v1458_v20  ;;  %v94_v7 = vld [vmem:[#allocation2 + $0x168] sm:$0xff]  ;;  %v104_v20 = vld [vmem:[#allocation2 + $0x1b8] sm:$0xff] }
  0x57   :  { %1321 = vmatprep.subr.bf16.mxu1 %v1459_v21  ;;  %v134_v12 = vpack.c.bf16 %v94_v7, %v86_v6  ;;  %v112_v21 = vld [vmem:[#allocation2 + $0x1f8] sm:$0xff] }
  0x58   :  { %713 = vmatmul.mubr.bf16.gmra.mrb[8].mxu0 %v129_v18  ;;  %v102_v18 = vld [vmem:[#allocation2 + $0x1a8] sm:$0xff] }
  0x59   :  { %778 = vmatmul.mubr.bf16.gmra.mrb[8].mxu1 %v131_v19  ;;  %1282 = vmatpush3.bf16.msra.mxu0 %v1460_v22  ;;  %v110_v19 = vld [vmem:[#allocation2 + $0x1e8] sm:$0xff]  ;;  %v133_v22 = vpack.c.bf16 %v93_v15, %v85_v14 }
  0x5a   :  { %1322 = vmatpush3.bf16.msra.mxu1 %v1461_v23  ;;  %1283 = vmatprep.subr.bf16.mxu0 %v1462_v24  ;;  %v135_v23 = vpack.c.bf16 %v95_v17, %v87_v16  ;;  %v142_v24 = vpack.c.bf16 %v110_v19, %v102_v18 }
  0x5b   :  { %1323 = vmatprep.subr.bf16.mxu1 %v1463_v25  ;;  %720 = vmatprep.mubr.bf16.mxu0 %v138_v31  ;;  %v144_v25 = vpack.c.bf16 %v112_v21, %v104_v20  ;;  %v143_v31 = vpack.c.bf16 %v111_v29, %v103_v28 }
  0x5c   :  { %785 = vmatprep.mubr.bf16.mxu1 %v140_v35  ;;  %v1477_v35 = vld [vmem:[%s1707_s3 + $0x18] sm:$0xff]  }
  0x5d   :  { %1284 = vmatpush3.bf16.msra.mxu0 %v1464_v26  ;;  %v101_v26 = vld [vmem:[#allocation2 + $0x1a0] sm:$0xff] }
  0x5e   :  { %1324 = vmatpush3.bf16.msra.mxu1 %v1465_v27  ;;  %1285 = vmatprep.subr.bf16.mxu0 %v1466_v40  ;;  %v109_v27 = vld [vmem:[#allocation2 + $0x1e0] sm:$0xff] }
  0x5f   :  { %1325 = vmatprep.subr.bf16.mxu1 %v1467_v41  ;;  %v141_v30 = vpack.c.bf16 %v109_v27, %v101_v26 }
  0x60   :  { %721 = vmatmul.mubr.bf16.gmra.mrb[12].mxu0 %v137_v36  ;;  %v1478_v36 = vld [vmem:[%s1707_s3 + $0x20] sm:$0xff]  }
  0x61   :  { %786 = vmatmul.mubr.bf16.gmra.mrb[12].mxu1 %v139_v39  ;;  %1286 = vmatpush3.bf16.msra.mxu0 %v1468_v42  ;;  %v1481_v39 = vld [vmem:[%s1707_s3 + $0x38] sm:$0xff]   ;;  %v1119_v42 = vld [vmem:[%s1706_s2] ss:$0 sm:$0xff] }
  0x62   :  { %1326 = vmatpush3.bf16.msra.mxu1 %v1469_v43  ;;  %1287 = vmatprep.subr.bf16.mxu0 %v1470_v44 }
  0x63   :  { %1327 = vmatprep.subr.bf16.mxu1 %v1471_v45  ;;  %826 = vmatprep.mubr.bf16.mxu0 %v118_v52 }
  0x64   :  { %891 = vmatprep.mubr.bf16.mxu1 %v120_v53 }
  0x65   :  { %1288 = vmatpush3.bf16.msra.mxu0 %v1472_v46 }
  0x66   :  { %1328 = vmatpush3.bf16.msra.mxu1 %v1473_v47  ;;  %1365 = vmatprep.subr.bf16.mxu0 %v1474_v32 }
  0x67   :  { %1389 = vmatprep.subr.bf16.mxu1 %v1474_v32 }
  0x68   :  { %827 = vmatmul.mubr.bf16.vlgmr.msra.gmra.mrb[16].mxu0 %v117_v57 }
  0x69   :  { %892 = vmatmul.mubr.bf16.vlgmr.msra.gmra.mrb[16].mxu1 %v119_v61  ;;  %834 = vmatprep.mubr.bf16.mxu0 %v126_v62 }
  0x6a   :  { %899 = vmatprep.mubr.bf16.mxu1 %v128_v1  ;;  %1366 = vmatpush3.bf16.msra.mxu0 %v1474_v32 }
  0x6b   :  { %1397 = vmatpush3.bf16.msra.mxu1 %v1474_v32  ;;  %1367 = vmatprep.subr.bf16.mxu0 %v1475_v33 }
  0x6c   :  { %1390 = vmatprep.subr.bf16.mxu1 %v1475_v33 }
  0x6e   :  { %1368 = vmatpush3.bf16.msra.mxu0 %v1475_v33 }
  0x6f   :  { %1398 = vmatpush3.bf16.msra.mxu1 %v1475_v33  ;;  %1369 = vmatprep.subr.bf16.mxu0 %v1476_v34 }
  0x70   :  { %835 = vmatmul.mubr.bf16.gmra.mrb[20].mxu0 %v125_v10  ;;  %1391 = vmatprep.subr.bf16.mxu1 %v1476_v34 }
  0x71   :  { %900 = vmatmul.mubr.bf16.gmra.mrb[20].mxu1 %v127_v11  ;;  %842 = vmatprep.mubr.bf16.mxu0 %v134_v12 }
  0x72   :  { %907 = vmatprep.mubr.bf16.mxu1 %v136_v13  ;;  %1370 = vmatpush3.bf16.msra.mxu0 %v1476_v34 }
  0x73   :  { %1399 = vmatpush3.bf16.msra.mxu1 %v1476_v34  ;;  %1371 = vmatprep.subr.bf16.mxu0 %v1477_v35 }
  0x74   :  { %1392 = vmatprep.subr.bf16.mxu1 %v1477_v35 }
  0x76   :  { %1372 = vmatpush3.bf16.msra.mxu0 %v1477_v35 }
  0x77   :  { %1400 = vmatpush3.bf16.msra.mxu1 %v1477_v35  ;;  %1373 = vmatprep.subr.bf16.mxu0 %v1478_v36 }
  0x78   :  { %843 = vmatmul.mubr.bf16.gmra.mrb[24].mxu0 %v133_v22  ;;  %1393 = vmatprep.subr.bf16.mxu1 %v1478_v36 }
  0x79   :  { %908 = vmatmul.mubr.bf16.gmra.mrb[24].mxu1 %v135_v23  ;;  %850 = vmatprep.mubr.bf16.mxu0 %v142_v24 }
  0x7a   :  { %915 = vmatprep.mubr.bf16.mxu1 %v144_v25  ;;  %1374 = vmatpush3.bf16.msra.mxu0 %v1478_v36 }
  0x7b   :  { %1401 = vmatpush3.bf16.msra.mxu1 %v1478_v36  ;;  %1375 = vmatprep.subr.bf16.mxu0 %v1479_v37 }
  0x7c   :  { %1394 = vmatprep.subr.bf16.mxu1 %v1479_v37 }
  0x7e   :  { %1376 = vmatpush3.bf16.msra.mxu0 %v1479_v37 }
  0x7f   :  { %1402 = vmatpush3.bf16.msra.mxu1 %v1479_v37  ;;  %1377 = vmatprep.subr.bf16.mxu0 %v1480_v38 }
  0x80   :  { %851 = vmatmul.mubr.bf16.gmra.mrb[28].mxu0 %v141_v30  ;;  %1395 = vmatprep.subr.bf16.mxu1 %v1480_v38 }
  0x81   :  { %916 = vmatmul.mubr.bf16.gmra.mrb[28].mxu1 %v143_v31 }
  0x82   :  { %1378 = vmatpush3.bf16.msra.mxu0 %v1480_v38 }
  0x83   :  { %1403 = vmatpush3.bf16.msra.mxu1 %v1480_v38  ;;  %1379 = vmatprep.subr.bf16.mxu0 %v1481_v39 }
  0x84   :  { %1396 = vmatprep.subr.bf16.mxu1 %v1481_v39 }
  0x86   :  { %1380 = vmatpush3.bf16.msra.mxu0 %v1481_v39 }
  0x87   :  { %1404 = vmatpush3.bf16.msra.mxu1 %v1481_v39 }
 0x11b   :  { %v1209_v40 = vpop.f32.mrb[0].mxu0 }
 0x11c   :  { %v1249_v41 = vpop.f32.mrb[0].mxu1  ;;  %v1210_v43 = vpop.f32.mrb[1].mxu0 }
 0x11d   :  { %v1211_v44 = vadd.f32 %v1210_v43, %v1209_v40  ;;  %v1250_v45 = vpop.f32.mrb[1].mxu1  ;;  %v1212_v46 = vpop.f32.mrb[2].mxu0 }
 0x11e   :  { %v1251_v47 = vadd.f32 %v1250_v45, %v1249_v41  ;;  %v1252_v48 = vpop.f32.mrb[2].mxu1  ;;  %v1213_v49 = vpop.f32.mrb[3].mxu0 }
 0x11f   :  { %v699_v50 = vadd.f32 %v1211_v44, %v1119_v42  ;;  %v1214_v51 = vadd.f32 %v1213_v49, %v1212_v46  ;;  %v1253_v52 = vpop.f32.mrb[3].mxu1 }
 0x120   :  { %v1254_v53 = vadd.f32 %v1253_v52, %v1252_v48 }
 0x121   :  { %v764_v54 = vadd.f32 %v1251_v47, %v699_v50  ;;  %v702_v55 = vadd.f32 %v1214_v51, %v1119_v42 }
 0x123   :  { %v1648_v56 = vadd.f32 %v1254_v53, %v702_v55  ;;  %v1215_v57 = vpop.f32.mrb[4].mxu0 }
 0x124   :  { %v1255_v58 = vpop.f32.mrb[4].mxu1  ;;  %v1216_v59 = vpop.f32.mrb[5].mxu0 }
 0x125   :  { %v1217_v60 = vadd.f32 %v1216_v59, %v1215_v57  ;;  %v1256_v61 = vpop.f32.mrb[5].mxu1  ;;  %v1218_v62 = vpop.f32.mrb[6].mxu0 }
 0x126   :  { %v1257_v63 = vadd.f32 %v1256_v61, %v1255_v58  ;;  %v1258_v0 = vpop.f32.mrb[6].mxu1  ;;  %v1219_v1 = vpop.f32.mrb[7].mxu0 }
 0x127   :  { %v707_v2 = vadd.f32 %v1217_v60, %v1119_v42  ;;  %v1220_v3 = vadd.f32 %v1219_v1, %v1218_v62  ;;  %v1259_v4 = vpop.f32.mrb[7].mxu1 }
 0x128   :  { %v1260_v5 = vadd.f32 %v1259_v4, %v1258_v0 }
 0x129   :  { %v1650_v6 = vadd.f32 %v1257_v63, %v707_v2  ;;  %v710_v7 = vadd.f32 %v1220_v3, %v1119_v42 }
 0x12b   :  { %v1652_v8 = vadd.f32 %v1260_v5, %v710_v7  ;;  %v1221_v9 = vpop.f32.mrb[8].mxu0 }
 0x12c   :  { %v1261_v10 = vpop.f32.mrb[8].mxu1  ;;  %v1222_v11 = vpop.f32.mrb[9].mxu0 }
 0x12d   :  { %v1262_v12 = vpop.f32.mrb[9].mxu1  ;;  %v1223_v13 = vadd.f32 %v1222_v11, %v1221_v9  ;;  %v1224_v15 = vpop.f32.mrb[10].mxu0 }
 0x12e   :  { %v1263_v14 = vadd.f32 %v1262_v12, %v1261_v10  ;;  %v1264_v16 = vpop.f32.mrb[10].mxu1  ;;  %v1225_v17 = vpop.f32.mrb[11].mxu0 }
 0x12f   :  { %v1265_v18 = vpop.f32.mrb[11].mxu1  ;;  %v715_v19 = vadd.f32 %v1223_v13, %v1119_v42  ;;  %v1226_v20 = vadd.f32 %v1225_v17, %v1224_v15 }
 0x130   :  { %v1266_v21 = vadd.f32 %v1265_v18, %v1264_v16 }
 0x131   :  { %v1654_v22 = vadd.f32 %v1263_v14, %v715_v19  ;;  %v718_v23 = vadd.f32 %v1226_v20, %v1119_v42 }
 0x133   :  { %v1656_v24 = vadd.f32 %v1266_v21, %v718_v23  ;;  %v1227_v25 = vpop.f32.mrb[12].mxu0 }
 0x134   :  { %v1267_v26 = vpop.f32.mrb[12].mxu1  ;;  %v1228_v27 = vpop.f32.mrb[13].mxu0 }
 0x135   :  { %v1229_v28 = vadd.f32 %v1228_v27, %v1227_v25  ;;  %v1268_v29 = vpop.f32.mrb[13].mxu1  ;;  %v1230_v30 = vpop.f32.mrb[14].mxu0 }
 0x136   :  { %v1269_v31 = vadd.f32 %v1268_v29, %v1267_v26  ;;  %v1270_v32 = vpop.f32.mrb[14].mxu1  ;;  %v1231_v33 = vpop.f32.mrb[15].mxu0 }
 0x137   :  { %v723_v34 = vadd.f32 %v1229_v28, %v1119_v42  ;;  %v1232_v35 = vadd.f32 %v1231_v33, %v1230_v30  ;;  %v1271_v36 = vpop.f32.mrb[15].mxu1 }
 0x138   :  { %v1272_v37 = vadd.f32 %v1271_v36, %v1270_v32 }
 0x139   :  { %v1658_v38 = vadd.f32 %v1269_v31, %v723_v34  ;;  %v726_v39 = vadd.f32 %v1232_v35, %v1119_v42 }
 0x13b   :  { %v1660_v40 = vadd.f32 %v1272_v37, %v726_v39  ;;  %v1289_v41 = vpop.f32.mrb[16].mxu0 }
 0x13c   :  { %v1329_v43 = vpop.f32.mrb[16].mxu1  ;;  %v1290_v44 = vpop.f32.mrb[17].mxu0 }
 0x13d   :  { %v1291_v45 = vadd.f32 %v1290_v44, %v1289_v41  ;;  %v1330_v46 = vpop.f32.mrb[17].mxu1  ;;  %v1292_v47 = vpop.f32.mrb[18].mxu0 }
 0x13e   :  { %v1331_v48 = vadd.f32 %v1330_v46, %v1329_v43  ;;  %v1332_v49 = vpop.f32.mrb[18].mxu1  ;;  %v1293_v50 = vpop.f32.mrb[19].mxu0 }
 0x13f   :  { %v829_v51 = vadd.f32 %v1291_v45, %v764_v54  ;;  %v1294_v52 = vadd.f32 %v1293_v50, %v1292_v47  ;;  %v1333_v53 = vpop.f32.mrb[19].mxu1 }
 0x140   :  { %v1334_v55 = vadd.f32 %v1333_v53, %v1332_v49 }
 0x141   :  { %v894_v57 = vadd.f32 %v1331_v48, %v829_v51  ;;  %v832_v58 = vadd.f32 %v1294_v52, %v1648_v56 }
 0x143   :  { %v924_v59 = vsub.f32 0.0, %v894_v57  ;;  %v897_v42 = vadd.f32 %v1334_v55, %v832_v58  ;;  %v1295_v60 = vpop.f32.mrb[20].mxu0 }
 0x144   :  { %v1335_v61 = vpop.f32.mrb[20].mxu1  ;;  %v1296_v62 = vpop.f32.mrb[21].mxu0 }
 0x145   :  { %v932_v63 = vmul.f32 1.442695, %v924_v59  ;;  %v925_v0 = vsub.f32 0.0, %v897_v42  ;;  %v1297_v1 = vadd.f32 %v1296_v62, %v1295_v60  ;;  %v1336_v2 = vpop.f32.mrb[21].mxu1  ;;  %v1298_v3 = vpop.f32.mrb[22].mxu0 }
 0x146   :  { %v1337_v4 = vadd.f32 %v1336_v2, %v1335_v61  ;;  %v1338_v5 = vpop.f32.mrb[22].mxu1  ;;  %v1299_v7 = vpop.f32.mrb[23].mxu0 }
 0x147   :  { %1482 = vpow2.f32 %v932_v63  ;;  %v934_v54 = vmul.f32 1.442695, %v925_v0  ;;  %v837_v9 = vadd.f32 %v1297_v1, %v1650_v6  ;;  %v1300_v10 = vadd.f32 %v1299_v7, %v1298_v3  ;;  %v1339_v11 = vpop.f32.mrb[23].mxu1 }
 0x148   :  { %v1340_v56 = vadd.f32 %v1339_v11, %v1338_v5 }
 0x149   :  { %1484 = vpow2.f32 %v934_v54  ;;  %v902_v12 = vadd.f32 %v1337_v4, %v837_v9  ;;  %v840_v13 = vadd.f32 %v1300_v10, %v1652_v8 }
 0x14b   :  { %v926_v14 = vsub.f32 0.0, %v902_v12  ;;  %v905_v15 = vadd.f32 %v1340_v56, %v840_v13  ;;  %v1301_v16 = vpop.f32.mrb[24].mxu0 }
 0x14c   :  { %v1341_v17 = vpop.f32.mrb[24].mxu1  ;;  %v1302_v18 = vpop.f32.mrb[25].mxu0 }
 0x14d   :  { %v936_v19 = vmul.f32 1.442695, %v926_v14  ;;  %v927_v20 = vsub.f32 0.0, %v905_v15  ;;  %v1303_v21 = vadd.f32 %v1302_v18, %v1301_v16  ;;  %v1342_v23 = vpop.f32.mrb[25].mxu1  ;;  %v1304_v25 = vpop.f32.mrb[26].mxu0 }
 0x14e   :  { %v1343_v26 = vadd.f32 %v1342_v23, %v1341_v17  ;;  %v1344_v27 = vpop.f32.mrb[26].mxu1  ;;  %v1305_v6 = vpop.f32.mrb[27].mxu0 }
 0x14f   :  { %1486 = vpow2.f32 %v936_v19  ;;  %v938_v28 = vmul.f32 1.442695, %v927_v20  ;;  %v845_v29 = vadd.f32 %v1303_v21, %v1654_v22  ;;  %v1306_v30 = vadd.f32 %v1305_v6, %v1304_v25  ;;  %v1345_v31 = vpop.f32.mrb[27].mxu1  ;;  %v1184_v25 = vld [vmem:[%s1708_s4] ss:$0 sm:$0xff] }
 0x150   :  { %v1346_v8 = vadd.f32 %v1345_v31, %v1344_v27 }
 0x151   :  { %v1483_v32 = vpop.eup %1482  ;;  %1488 = vpow2.f32 %v938_v28  ;;  %v910_v33 = vadd.f32 %v1343_v26, %v845_v29  ;;  %v848_v34 = vadd.f32 %v1306_v30, %v1656_v24 }
 0x152   :  { %v948_v35 = vadd.f32 1.0, %v1483_v32 }
 0x153   :  { %v1485_v36 = vpop.eup %1484  ;;  %v928_v37 = vsub.f32 0.0, %v910_v33  ;;  %v913_v39 = vadd.f32 %v1346_v8, %v848_v34  ;;  %v1307_v41 = vpop.f32.mrb[28].mxu0 }
 0x154   :  { %v949_v43 = vadd.f32 1.0, %v1485_v36  ;;  %v1347_v44 = vpop.f32.mrb[28].mxu1  ;;  %v1308_v45 = vpop.f32.mrb[29].mxu0  ;;  %1490 = vrcp.f32 %v948_v35 }
 0x155   :  { %v940_v46 = vmul.f32 1.442695, %v928_v37  ;;  %v929_v47 = vsub.f32 0.0, %v913_v39  ;;  %v1309_v22 = vadd.f32 %v1308_v45, %v1307_v41  ;;  %v1348_v48 = vpop.f32.mrb[29].mxu1  ;;  %v1310_v49 = vpop.f32.mrb[30].mxu0 }
 0x156   :  { %1492 = vrcp.f32 %v949_v43  ;;  %v1349_v50 = vadd.f32 %v1348_v48, %v1347_v44  ;;  %v1350_v51 = vpop.f32.mrb[30].mxu1  ;;  %v1311_v52 = vpop.f32.mrb[31].mxu0 }
 0x157   :  { %1494 = vpow2.f32 %v940_v46  ;;  %v942_v24 = vmul.f32 1.442695, %v929_v47  ;;  %v853_v53 = vadd.f32 %v1309_v22, %v1658_v38  ;;  %v1312_v55 = vadd.f32 %v1311_v52, %v1310_v49  ;;  %v1351_v57 = vpop.f32.mrb[31].mxu1 }
 0x158   :  { %v1352_v58 = vadd.f32 %v1351_v57, %v1350_v51 }
 0x159   :  { %v1487_v59 = vpop.eup %1486  ;;  %1496 = vpow2.f32 %v942_v24  ;;  %v918_v42 = vadd.f32 %v1349_v50, %v853_v53  ;;  %v856_v60 = vadd.f32 %v1312_v55, %v1660_v40 }
 0x15a   :  { %v950_v61 = vadd.f32 1.0, %v1487_v59 }
 0x15b   :  { %v1489_v62 = vpop.eup %1488  ;;  %v930_v63 = vsub.f32 0.0, %v918_v42  ;;  %v921_v0 = vadd.f32 %v1352_v58, %v856_v60 }
 0x15c   :  { %v951_v1 = vadd.f32 1.0, %v1489_v62  ;;  %1498 = vrcp.f32 %v950_v61 }
 0x15d   :  { %v944_v2 = vmul.f32 1.442695, %v930_v63  ;;  %v931_v3 = vsub.f32 0.0, %v921_v0 }
 0x15e   :  { %1500 = vrcp.f32 %v951_v1  ;;  %v1491_v4 = vpop.eup %1490 }
 0x15f   :  { %1502 = vpow2.f32 %v944_v2  ;;  %v946_v38 = vmul.f32 1.442695, %v931_v3 }
 0x160   :  { %v1493_v5 = vpop.eup %1492 }
 0x161   :  { %v1495_v7 = vpop.eup %1494  ;;  %1504 = vpow2.f32 %v946_v38  ;;  %v964_v54 = vpack.c.bf16 %v1493_v5, %v1491_v4 }
 0x162   :  { %v952_v9 = vadd.f32 1.0, %v1495_v7 }
 0x163   :  { %v1497_v10 = vpop.eup %1496  ;;  %1381 = vmatprep.mubr.bf16.mxu0 %v964_v54 }
 0x164   :  { %v953_v40 = vadd.f32 1.0, %v1497_v10  ;;  %1506 = vrcp.f32 %v952_v9 }
 0x166   :  { %1508 = vrcp.f32 %v953_v40  ;;  %v1499_v11 = vpop.eup %1498 }
 0x168   :  { %v1501_v56 = vpop.eup %1500 }
 0x169   :  { %v1503_v12 = vpop.eup %1502  ;;  %v965_v13 = vpack.c.bf16 %v1501_v56, %v1499_v11 }
 0x16a   :  { %v954_v14 = vadd.f32 1.0, %v1503_v12 }
 0x16b   :  { %v1505_v15 = vpop.eup %1504  ;;  %1382 = vmatmul.mubr.bf16.vlgmr.msra.gmra.mrb[32].mxu0 %v965_v13 }
 0x16c   :  { %v955_v16 = vadd.f32 1.0, %v1505_v15  ;;  %1510 = vrcp.f32 %v954_v14 }
 0x16e   :  { %1512 = vrcp.f32 %v955_v16  ;;  %v1507_v17 = vpop.eup %1506 }
 0x170   :  { %v1509_v18 = vpop.eup %1508 }
 0x171   :  { %v966_v19 = vpack.c.bf16 %v1509_v18, %v1507_v17 }
 0x173   :  { %1385 = vmatprep.mubr.bf16.mxu1 %v966_v19 }
 0x176   :  { %v1511_v20 = vpop.eup %1510 }
 0x178   :  { %v1513_v21 = vpop.eup %1512 }
 0x179   :  { %v967_v23 = vpack.c.bf16 %v1513_v21, %v1511_v20 }
 0x17b   :  { %1386 = vmatmul.mubr.bf16.vlgmr.msra.gmra.mrb[32].mxu1 %v967_v23 }
 0x23e   :  { %v1383_v26 = vpop.f32.mrb[32].mxu0 }
 0x23f   :  { %v1082_v27 = vadd.f32 %v1383_v26, %v1184_v25  ;;  %v1073_v6 = vpop.f32.mrb[33].mxu0 }
 0x240   :  { %v1074_v28 = vadd.f32 %v1184_v25, %v1073_v6  ;;  %v1384_v29 = vpop.f32.mrb[34].mxu0 }
 0x241   :  { %1107 = vst.msk [vmem:[%s1709_s5 + $0x10] sm:$0xff] %vm1104_vm0, %v1082_v27  ;;  %v1085_v30 = vadd.f32 %v1384_v29, %v1184_v25  ;;  %v1076_v31 = vpop.f32.mrb[35].mxu0 }
 0x242   :  { %1105 = vst.msk [vmem:[%s1709_s5] sm:$0xff] %vm1104_vm0, %v1074_v28  ;;  %v1077_v8 = vadd.f32 %v1184_v25, %v1076_v31 }
 0x243   :  { %1108 = vst.msk [vmem:[%s1709_s5 + $0x18] sm:$0xff] %vm1104_vm0, %v1085_v30 }
 0x244   :  { %1106 = vst.msk [vmem:[%s1709_s5 + $0x8] sm:$0xff] %vm1104_vm0, %v1077_v8 }
 0x24e   :  { %v1387_v32 = vpop.f32.mrb[32].mxu1 }
 0x24f   :  { %v1098_v33 = vadd.f32 %v1387_v32, %v1184_v25  ;;  %v1089_v34 = vpop.f32.mrb[33].mxu1 }
 0x250   :  { %v1090_v35 = vadd.f32 %v1184_v25, %v1089_v34  ;;  %v1388_v36 = vpop.f32.mrb[34].mxu1 }
 0x251   :  { %1111 = vst.msk [vmem:[%s1709_s5 + $0x30] sm:$0xff] %vm1104_vm0, %v1098_v33  ;;  %v1101_v37 = vadd.f32 %v1388_v36, %v1184_v25  ;;  %v1092_v39 = vpop.f32.mrb[35].mxu1 }
 0x252   :  { %1109 = vst.msk [vmem:[%s1709_s5 + $0x20] sm:$0xff] %vm1104_vm0, %v1090_v35  ;;  %v1093_v41 = vadd.f32 %v1184_v25, %v1092_v39 }
 0x253   :  { %1112 = vst.msk [vmem:[%s1709_s5 + $0x38] sm:$0xff] %vm1104_vm0, %v1101_v37 }
 0x254   :  { %1110 = vst.msk [vmem:[%s1709_s5 + $0x28] sm:$0xff] %vm1104_vm0, %v1093_v41 }
 0x255   :  { %1117 = vsyncpa [#allocation3], 1 }
 0x256   :  { %1118 = vsyncpa [#allocation5], 1 }

</bundles_post_ra>
